<compile_context>
chip_gen: v5e
topology: v5e:2x2
jax: 0.10.0
libtpu: 0.0.40
codegen_flags: <defaults>
</compile_context>

<pallas_src>
import functools

import jax
import jax.numpy as jnp
from jax.experimental import pallas as pl
from jax.experimental.pallas import tpu as pltpu


def _ce_partial_kernel(logits_ref, targets_ref, out_ref, *, n_valid, tile_n):
    i = pl.program_id(0)

    x = logits_ref[...]                                  # [tile_n, C] native dtype
    t = targets_ref[...]                                 # [tile_n, 1] int32
    tn, c = x.shape

    # Numerically-stable log-softmax. Max reduce runs in the native dtype
    # (exact for max); only the shifted values are promoted to f32.
    row_max = jnp.max(x, axis=-1, keepdims=True)                       # [tn, 1]
    shifted = x.astype(jnp.float32) - row_max.astype(jnp.float32)      # [tn, C]
    lse = jnp.log(jnp.sum(jnp.exp(shifted), axis=-1, keepdims=True))   # [tn, 1]

    # Fused target-class gather: iota -> compare -> multiply -> lane reduce.
    classes = jax.lax.broadcasted_iota(jnp.int32, (tn, c), 1)
    onehot = (classes == t).astype(jnp.float32)
    tgt = jnp.sum(shifted * onehot, axis=-1, keepdims=True)            # [tn, 1]

    nll = lse - tgt                                                    # [tn, 1]

    # Mask the ragged last batch tile with where (NaN-safe for garbage rows
    # read past the end of the array).
    row_idx = i * tile_n + jax.lax.broadcasted_iota(jnp.int32, (tn, 1), 0)
    nll = jnp.where(row_idx < n_valid, nll, 0.0)
    partial = jnp.sum(nll)

    # Lane-dense, unmasked store of this tile's partial sum.
    out_ref[...] = jnp.full(out_ref.shape, partial, dtype=jnp.float32)


def cross_entropy_loss(logits, targets, tile_n=None):
    """logits: [N, C] float (any float dtype), targets: [N] int -> scalar f32."""
    n, c = logits.shape
    itemsize = jnp.dtype(logits.dtype).itemsize

    # Lane-padded width the VMEM tile actually occupies (for sizing only —
    # no data is padded, the compiler handles the ragged lane tail).
    c_lanes = max(128, ((c + 127) // 128) * 128)

    # Per-generation VMEM budget (v5e/v6e 128 MiB, v7x 64 MiB); ~35% for this
    # kernel's working set, leaving headroom for Mosaic internal scratch.
    try:
        vmem_cap = int(pltpu.get_tpu_info().vmem_capacity_bytes)
    except Exception:  # pragma: no cover - fallback if query unavailable
        vmem_cap = 64 * 1024 * 1024
    budget = int(0.35 * vmem_cap)

    # Per-row cost: double-buffered native-dtype input plus ~5 full-width f32
    # intermediates (shifted, exp, iota, onehot, product) inside the body.
    per_row_bytes = c_lanes * (2 * itemsize + 5 * 4)

    if tile_n is None:
        tile_n = budget // per_row_bytes
    tile_n = max(8, (int(tile_n) // 8) * 8)
    n_ceil8 = ((n + 7) // 8) * 8
    tile_n = min(tile_n, n_ceil8)

    num_tiles = pl.cdiv(n, tile_n)

    targets2d = targets.astype(jnp.int32).reshape(n, 1)

    # Explicit VMEM limit covering double-buffered inputs + f32 intermediates
    # + outputs + slack, clamped to physical capacity.
    tile_in_bytes = tile_n * c_lanes * itemsize
    tile_mid_bytes = tile_n * c_lanes * 4 * 5
    vmem_limit = int(
        min(vmem_cap,
            max(16 * 1024 * 1024,
                2 * tile_in_bytes + tile_mid_bytes
                + 2 * tile_n * 4 + 2 * 8 * 128 * 4 + (4 << 20)))
    )

    kernel = functools.partial(_ce_partial_kernel, n_valid=n, tile_n=tile_n)

    partials = pl.pallas_call(
        kernel,
        out_shape=jax.ShapeDtypeStruct((num_tiles, 8, 128), jnp.float32),
        grid_spec=pltpu.PrefetchScalarGridSpec(
            num_scalar_prefetch=0,
            grid=(num_tiles,),
            in_specs=[
                pl.BlockSpec((tile_n, c), lambda i: (i, 0)),
                pl.BlockSpec((tile_n, 1), lambda i: (i, 0)),
            ],
            out_specs=pl.BlockSpec((1, 8, 128), lambda i: (i, 0, 0)),
        ),
        compiler_params=pltpu.CompilerParams(
            dimension_semantics=("parallel",),
            vmem_limit_bytes=vmem_limit,
        ),
    )(logits, targets2d)

    # Mean reduction: tiny host-side-of-kernel reduce, multiply by 1/N.
    return jnp.sum(partials[:, 0, 0]) * jnp.float32(1.0 / n)


if __name__ == "__main__":
    # The Loss module has no learnable parameters; only synthetic inputs needed.
    key = jax.random.PRNGKey(0)
    k_logits, k_targets = jax.random.split(key)

    N, C = 8, 32  # small batch of 8 samples, 32 classes
    logits = jax.random.normal(k_logits, (N, C), dtype=jnp.float32)
    targets = jax.random.randint(k_targets, (N,), 0, C, dtype=jnp.int32)

    loss = cross_entropy_loss(logits, targets)
    jax.block_until_ready(loss)

    # sanity check against a pure-JAX reference of nn.CrossEntropyLoss
    ref = jnp.mean(
        jax.scipy.special.logsumexp(logits, axis=-1)
        - jnp.take_along_axis(logits, targets[:, None], axis=-1)[:, 0]
    )
    assert jnp.allclose(loss, ref, atol=1e-5, rtol=1e-5), (loss, ref)

    print("KERNEL_OK")
</pallas_src>

<mosaic_0001>
module attributes {stable_mosaic.version = 11 : i64} {
  func.func @_ce_partial_kernel(%arg0: i32, %arg1: memref<8x32xf32, #tpu.memory_space<vmem>>, %arg2: memref<8x1xi32, #tpu.memory_space<vmem>>, %arg3: memref<1x8x128xf32, #tpu.memory_space<vmem>>) attributes {dimension_semantics = [#tpu.dimension_semantics<parallel>], iteration_bounds = array<i64: 1>, scalar_prefetch = 0 : i64, scratch_operands = 0 : i64, tpu.core_type = #tpu.core_type<tc>, window_params = [{transform_indices = @transform_0, window_bounds = array<i64: 8, 32>}, {transform_indices = @transform_1, window_bounds = array<i64: 8, 1>}, {transform_indices = @transform_2, window_bounds = array<i64: 1, 8, 128>}]} {
    %c0 = arith.constant 0 : index
    %c0_0 = arith.constant 0 : index
    %0 = vector.load %arg1[%c0, %c0_0] : memref<8x32xf32, #tpu.memory_space<vmem>>, vector<8x32xf32>
    %c0_1 = arith.constant 0 : index
    %c0_2 = arith.constant 0 : index
    %1 = vector.load %arg2[%c0_1, %c0_2] : memref<8x1xi32, #tpu.memory_space<vmem>>, vector<8x1xi32>
    %cst = arith.constant dense<0xFF800000> : vector<8xf32>
    %2 = vector.multi_reduction <maximumf>, %0, %cst [1] : vector<8x32xf32> to vector<8xf32>
    %3 = vector.shape_cast %2 : vector<8xf32> to vector<8x1xf32>
    %4 = vector.broadcast %3 : vector<8x1xf32> to vector<8x32xf32>
    %5 = arith.subf %0, %4 : vector<8x32xf32>
    %6 = math.exp %5 : vector<8x32xf32>
    %cst_3 = arith.constant dense<0.000000e+00> : vector<8xf32>
    %7 = vector.multi_reduction <add>, %6, %cst_3 [1] : vector<8x32xf32> to vector<8xf32>
    %8 = vector.shape_cast %7 : vector<8xf32> to vector<8x1xf32>
    %9 = math.log %8 : vector<8x1xf32>
    %10 = tpu.iota {dimensions = array<i32: 1>} : vector<8x32xi32>
    %11 = vector.broadcast %1 : vector<8x1xi32> to vector<8x32xi32>
    %12 = arith.cmpi eq, %10, %11 : vector<8x32xi32>
    %13 = arith.extui %12 : vector<8x32xi1> to vector<8x32xi32>
    %14 = arith.sitofp %13 : vector<8x32xi32> to vector<8x32xf32>
    %15 = arith.mulf %5, %14 : vector<8x32xf32>
    %cst_4 = arith.constant dense<0.000000e+00> : vector<8xf32>
    %16 = vector.multi_reduction <add>, %15, %cst_4 [1] : vector<8x32xf32> to vector<8xf32>
    %17 = vector.shape_cast %16 : vector<8xf32> to vector<8x1xf32>
    %18 = arith.subf %9, %17 : vector<8x1xf32>
    %c8_i32 = arith.constant 8 : i32
    %19 = arith.muli %arg0, %c8_i32 : i32
    %20 = tpu.iota {dimensions = array<i32: 0>} : vector<8x1xi32>
    %21 = vector.broadcast %19 : i32 to vector<8x1xi32>
    %22 = arith.addi %21, %20 : vector<8x1xi32>
    %c8_i32_5 = arith.constant 8 : i32
    %23 = vector.broadcast %c8_i32_5 : i32 to vector<8x1xi32>
    %24 = arith.cmpi slt, %22, %23 : vector<8x1xi32>
    %cst_6 = arith.constant 0.000000e+00 : f32
    %25 = vector.broadcast %cst_6 : f32 to vector<8x1xf32>
    %26 = arith.select %24, %18, %25 : vector<8x1xi1>, vector<8x1xf32>
    %27 = vector.shape_cast %26 : vector<8x1xf32> to vector<1x8x1xf32>
    %cst_7 = arith.constant dense<0.000000e+00> : vector<1xf32>
    %28 = vector.multi_reduction <add>, %27, %cst_7 [1, 2] : vector<1x8x1xf32> to vector<1xf32>
    %29 = vector.shape_cast %28 : vector<1xf32> to vector<1x1x1xf32>
    %30 = vector.extract %29[0, 0, 0] : f32 from vector<1x1x1xf32>
    %31 = vector.broadcast %30 : f32 to vector<1x8x128xf32>
    %c0_8 = arith.constant 0 : index
    %c0_9 = arith.constant 0 : index
    %c0_10 = arith.constant 0 : index
    %32 = vector.load %arg3[%c0_8, %c0_9, %c0_10] : memref<1x8x128xf32, #tpu.memory_space<vmem>>, vector<1x8x128xf32>
    tpu.vector_store %arg3[%c0_8, %c0_9, %c0_10], %31 {strides = array<i32>} : memref<1x8x128xf32, #tpu.memory_space<vmem>>, vector<1x8x128xf32>,
    return
  }
  func.func @transform_0(%arg0: i32) -> (i32, i32) {
    %c0_i32 = arith.constant 0 : i32
    %c0_i32_0 = arith.constant 0 : i32
    return %arg0, %c0_i32 : i32, i32
  }
  func.func @transform_1(%arg0: i32) -> (i32, i32) {
    %c0_i32 = arith.constant 0 : i32
    %c0_i32_0 = arith.constant 0 : i32
    return %arg0, %c0_i32 : i32, i32
  }
  func.func @transform_2(%arg0: i32) -> (i32, i32, i32) {
    %c0_i32 = arith.constant 0 : i32
    %c0_i32_0 = arith.constant 0 : i32
    %c0_i32_1 = arith.constant 0 : i32
    return %arg0, %c0_i32, %c0_i32_0 : i32, i32, i32
  }
}

</mosaic_0001>

<bundles_post_ra>
// kernel: tpu_custom_call.1
= control target key start
LH: loop header
LB: loop body
LE: loop exit
PB: predicated region body
PF: predicated region fallthrough
CT: control target
= control target key end

     0   :  { %vm14_vm0 = vcmask 261120   ;;  %s142_s0 = inlined_call_operand.vmem [shape: f32[8,32], index: 0, kind: input, shape index: {}]   ;;  %s143_s1 = inlined_call_operand.vmem [shape: s32[8,1], index: 1, kind: input, shape index: {}]   ;;  %s144_s2 = inlined_call_operand.hbm [shape: f32[1,8,128], index: 2, kind: output, shape index: {}]  }
   0x1   :  { %v12_v0 = vld [vmem:[%s142_s0] sm:$0xff] }
   0x2   :  { %7 = vsyncpa [#allocation3], 0  ;;  %v15_v1 = vsel %vm14_vm0, %v12_v0, -inf  ;;  %v112_v2 = vmov 0   ;;  %v13_v3 = vld [vmem:[%s143_s1] sm:$0xff]  ;;  %v26_v9 = vlaneseq  ;;  %v113_v12 = vmov 0.0  }
   0x3   :  { %81 = vset.pattern.permute.xlu0 %v112_v2  ;;  %vm46_vm2 = vcmask 7168   ;;  %s114_s0 = smov [#allocation2]   ;;  %s66_s15 = sshll.u32 %s144_s2, 4  ;;  %s67_s15 = int_to_ptr.hbm [resolvable:$true] %s66_s15 }
   0x4   :  { %16 = vmax.xlane.f32.xlu0 %v15_v1  ;;  %v27_v10 = vand.u32 127, %v26_v9  ;;  %s64_s1 = sshll.u32 %s114_s0, 4  ;;  %s65_s1 = int_to_ptr.vmem [resolvable:$true] %s64_s1 }
  0x18   :  { %29 = vperm.xlu0 %81, %v13_v3  }
  0x77   :  { %v17_v4 = vpop.xlane.xlu0 %16 }
  0x78   :  { %v18_v5 = vsub.f32 %v12_v0, %v17_v4 }
  0x7a   :  { %v19_v6 = vmul.f32 1.442695, %v18_v5 }
  0x7c   :  { %82 = vpow2.f32 %v19_v6 }
  0x82   :  { %v83_v7 = vpop.eup %82 }
  0x83   :  { %v21_v8 = vsel %vm14_vm0, %v83_v7, 0.0 }
  0x84   :  { %22 = vadd.xlane.f32.xlu1 %v21_v8 }
  0x8a   :  { %v30_v11 = vpop.permute.xlu0 %29 }
  0x8b   :  { %vm31_vm1 = vcmp.eq.s32.totalorder %v27_v10, %v30_v11 }
  0x8c   :  { %v75_v13 = vsel %vm31_vm1, 1.0, %v113_v12 }
  0x8d   :  { %v34_v14 = vmul.f32 %v75_v13, %v18_v5 }
  0x8f   :  { %v35_v15 = vsel %vm14_vm0, %v34_v14, 0.0 }
  0x90   :  { %36 = vadd.xlane.f32.xlu1 %v35_v15 }
  0xf7   :  { %v23_v16 = vpop.xlane.xlu1 %22 }
  0xf8   :  { %84 = vlog2.f32 %v23_v16 }
  0xfe   :  { %v85_v17 = vpop.eup %84 }
  0xff   :  { %v25_v18 = vmul.f32 0.6931472, %v85_v17 }
 0x103   :  { %v37_v19 = vpop.xlane.xlu1 %36 }
 0x104   :  { %v38_v20 = vsub.f32 %v25_v18, %v37_v19 }
 0x106   :  { %v47_v21 = vsel %vm46_vm2, %v38_v20, 0.0 }
 0x107   :  { %48 = vadd.xlane.f32.xlu2 %v47_v21 }
 0x17a   :  { %v49_v22 = vpop.xlane.xlu2 %48 }
 0x17b   :  { %v50_v23 = vrot.slane %v49_v22, 4 }
 0x17d   :  { %v51_v24 = vadd.f32 %v50_v23, %v49_v22 }
 0x17f   :  { %v52_v25 = vrot.slane %v51_v24, 2 }
 0x181   :  { %v53_v26 = vadd.f32 %v52_v25, %v51_v24 }
 0x183   :  { %v54_v27 = vrot.slane %v53_v26, 1 }
 0x185   :  { %v55_v28 = vadd.f32 %v54_v27, %v53_v26 }
 0x187   :  { %76 = vpush %v55_v28 }
 0x1b8   :  { %s77_s16 = spop %76 }
 0x1b9   :  { %v57_v29 = vstv %s77_s16 }
 0x1ba   :  { %58 = vst [vmem:[#allocation2] sm:$0xff] %v57_v29 }
 0x1bb   :  { %69 = dma.vmem_to_hbm [thread:$0]  %s65_s1, 128, %s67_s15, [#allocation3]  }
 0x1bc   :  { %110 = dma.done.wait [#allocation3], 128  }
 0x1bd   :  { %111 = vsyncadd [#allocation3], 4294967168 }
 0x1be   :  { %74 = vsyncpa [#allocation3], 1 }

</bundles_post_ra>
